<compile_context>
chip_gen: v7x
topology: tpu7x:2x2x1
jax: 0.10.0
libtpu: 0.0.40
codegen_flags: <defaults>
</compile_context>

<pallas_src>
import jax
import jax.numpy as jnp
from jax.experimental import pallas as pl
from jax.experimental.pallas import tpu as pltpu


def _learnable_sigmoid_kernel(alpha_ref, beta_ref, x_ref, o_ref):
    # alpha/beta: (1, F) f32, broadcast over the row tile.
    # x: (tm, F) in input dtype.
    a = alpha_ref[...]                            # (1, F) f32
    b = beta_ref[...]                             # (1, F) f32
    x = x_ref[...].astype(jnp.float32)            # (tm, F) f32
    t = 1.0 + jnp.exp(1.0 - a * x)                # EUP exp; +inf for very neg a*x
    o_ref[...] = (b / t).astype(o_ref.dtype)      # exact; b/inf -> 0 as expected


def learnable_sigmoid(x, alpha, beta, *, row_tile=2048):
    """x: (..., F); alpha, beta: (F,). Returns same shape/dtype as x."""
    orig_shape = x.shape
    F = orig_shape[-1]
    x2 = x.reshape(-1, F)
    M = x2.shape[0]

    # Params stay f32 for precision; compute is f32, store is x.dtype.
    a2 = alpha.reshape(1, F).astype(jnp.float32)
    b2 = beta.reshape(1, F).astype(jnp.float32)

    if M <= row_tile:
        # Single full-extent block: no padding, no (8,128) divisibility issue
        # because the block equals the full array dims.
        tm = M
        Mp = M
        xp = x2
    else:
        # Row tile: big to amortize per-step overhead, multiple of 8 (sublane).
        tm = max(8, (row_tile // 8) * 8)
        Mp = pl.cdiv(M, tm) * tm
        if Mp != M:
            xp = jnp.pad(x2, ((0, Mp - M), (0, 0)))
        else:
            xp = x2

    out = pl.pallas_call(
        _learnable_sigmoid_kernel,
        out_shape=jax.ShapeDtypeStruct((Mp, F), x.dtype),
        grid_spec=pltpu.PrefetchScalarGridSpec(
            num_scalar_prefetch=0,
            grid=(Mp // tm,),                               # all blocks full
            in_specs=[
                pl.BlockSpec((1, F), lambda i: (0, 0)),     # alpha (resident)
                pl.BlockSpec((1, F), lambda i: (0, 0)),     # beta  (resident)
                pl.BlockSpec((tm, F), lambda i: (i, 0)),    # x
            ],
            out_specs=pl.BlockSpec((tm, F), lambda i: (i, 0)),
        ),
        compiler_params=pltpu.CompilerParams(
            dimension_semantics=("parallel",),   # shards grid across TCs on v7x
        ),
    )(a2, b2, xp)

    if Mp != M:
        out = out[:M]
    return out.reshape(orig_shape)


if __name__ == "__main__":
    in_features = 201   # module default
    alpha_init = 1.0
    beta_init = 2.0

    # Deterministic param init, matching nn.Parameter(torch.ones(F) * c)
    alpha = jnp.ones((in_features,), jnp.float32) * alpha_init
    beta = jnp.ones((in_features,), jnp.float32) * beta_init

    key = jax.random.PRNGKey(0)
    # small input: (batch=2, seq=8, features=201)
    x = jax.random.normal(key, (2, 8, in_features), jnp.float32)

    out = jax.block_until_ready(learnable_sigmoid(x, alpha, beta))

    # Pure-JAX reference.
    ref = beta / (1.0 + jnp.exp(1.0 - alpha * x))
    assert out.shape == x.shape and out.dtype == x.dtype
    assert jnp.allclose(out, ref, atol=1e-4, rtol=1e-4), "mismatch vs reference"

    # Exercise the padded (M > row_tile, non-divisible) path with an odd row count.
    x_tail = jax.random.normal(jax.random.PRNGKey(1), (40, in_features), jnp.float32)
    out_tail = jax.block_until_ready(
        learnable_sigmoid(x_tail, alpha, beta, row_tile=16))
    ref_tail = beta / (1.0 + jnp.exp(1.0 - alpha * x_tail))
    assert out_tail.shape == x_tail.shape
    assert jnp.allclose(out_tail, ref_tail, atol=1e-4, rtol=1e-4), "tail mismatch"

    print("KERNEL_OK")
</pallas_src>

<mosaic_0001>
module attributes {stable_mosaic.version = 11 : i64} {
  func.func @_learnable_sigmoid_kernel(%arg0: i32, %arg1: memref<1x201xf32, #tpu.memory_space<vmem>>, %arg2: memref<1x201xf32, #tpu.memory_space<vmem>>, %arg3: memref<16x201xf32, #tpu.memory_space<vmem>>, %arg4: memref<16x201xf32, #tpu.memory_space<vmem>>) attributes {dimension_semantics = [#tpu.dimension_semantics<parallel>], iteration_bounds = array<i64: 1>, scalar_prefetch = 0 : i64, scratch_operands = 0 : i64, tpu.core_type = #tpu.core_type<tc>, window_params = [{pipeline_mode = #tpu.pipeline_mode<synchronous>, transform_indices = @transform_0, window_bounds = array<i64: 1, 201>}, {pipeline_mode = #tpu.pipeline_mode<synchronous>, transform_indices = @transform_1, window_bounds = array<i64: 1, 201>}, {transform_indices = @transform_2, window_bounds = array<i64: 16, 201>}, {transform_indices = @transform_3, window_bounds = array<i64: 16, 201>}]} {
    %c0 = arith.constant 0 : index
    %c0_0 = arith.constant 0 : index
    %0 = vector.load %arg1[%c0, %c0_0] : memref<1x201xf32, #tpu.memory_space<vmem>>, vector<1x201xf32>
    %c0_1 = arith.constant 0 : index
    %c0_2 = arith.constant 0 : index
    %1 = vector.load %arg2[%c0_1, %c0_2] : memref<1x201xf32, #tpu.memory_space<vmem>>, vector<1x201xf32>
    %c0_3 = arith.constant 0 : index
    %c0_4 = arith.constant 0 : index
    %2 = vector.load %arg3[%c0_3, %c0_4] : memref<16x201xf32, #tpu.memory_space<vmem>>, vector<16x201xf32>
    %3 = vector.broadcast %0 : vector<1x201xf32> to vector<16x201xf32>
    %4 = arith.mulf %3, %2 : vector<16x201xf32>
    %cst = arith.constant 1.000000e+00 : f32
    %5 = vector.broadcast %cst : f32 to vector<16x201xf32>
    %6 = arith.subf %5, %4 : vector<16x201xf32>
    %7 = math.exp %6 : vector<16x201xf32>
    %cst_5 = arith.constant 1.000000e+00 : f32
    %8 = vector.broadcast %cst_5 : f32 to vector<16x201xf32>
    %9 = arith.addf %8, %7 : vector<16x201xf32>
    %10 = vector.broadcast %1 : vector<1x201xf32> to vector<16x201xf32>
    %11 = arith.divf %10, %9 : vector<16x201xf32>
    %c0_6 = arith.constant 0 : index
    %c0_7 = arith.constant 0 : index
    %12 = vector.load %arg4[%c0_6, %c0_7] : memref<16x201xf32, #tpu.memory_space<vmem>>, vector<16x201xf32>
    tpu.vector_store %arg4[%c0_6, %c0_7], %11 {strides = array<i32>} : memref<16x201xf32, #tpu.memory_space<vmem>>, vector<16x201xf32>,
    return
  }
  func.func @transform_0(%arg0: i32) -> (i32, i32) {
    %c0_i32 = arith.constant 0 : i32
    %c0_i32_0 = arith.constant 0 : i32
    %c0_i32_1 = arith.constant 0 : i32
    return %c0_i32, %c0_i32_0 : i32, i32
  }
  func.func @transform_1(%arg0: i32) -> (i32, i32) {
    %c0_i32 = arith.constant 0 : i32
    %c0_i32_0 = arith.constant 0 : i32
    %c0_i32_1 = arith.constant 0 : i32
    return %c0_i32, %c0_i32_0 : i32, i32
  }
  func.func @transform_2(%arg0: i32) -> (i32, i32) {
    %c0_i32 = arith.constant 0 : i32
    %c0_i32_0 = arith.constant 0 : i32
    return %arg0, %c0_i32 : i32, i32
  }
  func.func @transform_3(%arg0: i32) -> (i32, i32) {
    %c0_i32 = arith.constant 0 : i32
    %c0_i32_0 = arith.constant 0 : i32
    return %arg0, %c0_i32 : i32, i32
  }
}

</mosaic_0001>

<bundles_post_ra>
// kernel: tpu_custom_call.1
= control target key start
LH: loop header
LB: loop body
LE: loop exit
PB: predicated region body
PF: predicated region fallthrough
CT: control target
= control target key end

     0   :  { %8 = vsyncpa [#allocation3], 0  ;;  %s290_s0 = inlined_call_operand.hbm [shape: f32[1,201], index: 0, kind: input, shape index: {}]   ;;  %s291_s1 = inlined_call_operand.vmem [shape: f32[1,201], index: 1, kind: input, shape index: {}]   ;;  %s292_s2 = inlined_call_operand.hbm [shape: f32[16,201], index: 2, kind: input, shape index: {}]   ;;  %s293_s3 = inlined_call_operand.hbm [shape: f32[16,201], index: 3, kind: output, shape index: {}]  }
   0x1   :  { %9 = vsyncpa [#allocation6], 0 }
   0x2   :  { %10 = vsyncpa [#allocation4], 0  ;;  %s213_s12 = smov [#allocation2]   ;;  %s214_s14 = smov [#allocation5]  }
   0x3   :  { %s17_s13 = sshll.u32 %s213_s12, 4  ;;  %s28_s15 = sshll.u32 %s214_s14, 4  ;;  %s18_s13 = int_to_ptr.vmem [resolvable:$true] %s17_s13  ;;  %s238_s15 = int_to_ptr.vmem [resolvable:$true] %s28_s15 }
   0x4   :  { %s141_s18 = scalar_lea.hbm %s290_s0, 32 }
   0x5   :  { %p142_p0 = scmp.ne.s32.totalorder %s290_s0, %s141_s18  ;;  %p145_p1 = scmp.lt.u32.totalorder %s141_s18, %s290_s0 }
   0x7   :  { %p147_p2 = pnand %p145_p1, %p142_p0 }
   0x9   :  { %150 = shalt.err (!%p147_p2)
}
   0xa   :  { %s151_s23 = scalar_lea.vmem %s18_s13, 32  ;;  %p156_p4 = scmp.lt.s32.totalorder %s18_s13, %s18_s13 }
   0xb   :  { %p152_p3 = scmp.ne.s32.totalorder %s18_s13, %s151_s23  ;;  %p157_p5 = scmp.lt.s32.totalorder %s151_s23, %s151_s23 }
   0xd   :  { %p158_p6 = por %p157_p5, %p156_p4 }
   0xf   :  { %p159_p7 = pnand %p158_p6, %p152_p3 }
  0x11   :  { %162 = shalt.err (!%p159_p7)
}
  0x12   :  { %20 = dma.hbm_to_vmem [thread:$0]  %s290_s0, 32, %s18_s13, [#allocation3]  }
  0x13   :  { %s163_s28 = scalar_lea.hbm %s292_s2, 512 }
  0x14   :  { %p164_p8 = scmp.ne.s32.totalorder %s292_s2, %s163_s28  ;;  %p167_p9 = scmp.lt.u32.totalorder %s163_s28, %s292_s2 }
  0x16   :  { %p169_p10 = pnand %p167_p9, %p164_p8 }
  0x18   :  { %172 = shalt.err (!%p169_p10)
}
  0x19   :  { %s173_s6 = scalar_lea.vmem %s238_s15, 512  ;;  %p178_p12 = scmp.lt.s32.totalorder %s238_s15, %s238_s15 }
  0x1a   :  { %p174_p11 = scmp.ne.s32.totalorder %s238_s15, %s173_s6  ;;  %p179_p13 = scmp.lt.s32.totalorder %s173_s6, %s173_s6 }
  0x1c   :  { %p180_p0 = por %p179_p13, %p178_p12 }
  0x1e   :  { %p181_p1 = pnand %p180_p0, %p174_p11 }
  0x20   :  { %184 = shalt.err (!%p181_p1)
}
  0x21   :  { %s215_s0 = smov 256   ;;  %s216_s7 = smov 16  }
  0x22   :  { %34 = dma.hbm_to_vmem [thread:$0]  %s292_s2, 512, %s238_s15, [#allocation6], %s215_s0, %s215_s0, %s216_s7  }
  0x23   :  { %207 = dma.done.wait [#allocation3], 32  }
  0x24   :  { %208 = vsyncadd [#allocation3], 4294967264 }
  0x25   :  { %209 = dma.done.wait [#allocation6], 512  }
  0x26   :  { %210 = vsyncadd [#allocation6], 4294966784  ;;  %v48_v0 = vlaneseq  ;;  %v41_v4 = vld [vmem:[#allocation2] sm:$0x3]  ;;  %v43_v5 = vld [vmem:[#allocation5] sm:$0xff]  ;;  %vm98_vm0 = vcmask 596992  }
  0x27   :  { %v44_v6 = vld [vmem:[#allocation5 + $0x8] sm:$0xff]  ;;  %v45_v7 = vld [vmem:[#allocation5 + $0x10] sm:$0xff]  ;;  %v46_v8 = vld [vmem:[#allocation5 + $0x18] sm:$0xff]  ;;  %s217_s11 = smov [#allocation7]  }
  0x28   :  { %v49_v1 = vshrl.u32 %v48_v0, 7  ;;  %v42_v31 = vld [vmem:[%s291_s1] sm:$0x3]  ;;  %s107_s12 = sshll.u32 %s217_s11, 4  ;;  %s108_s12 = int_to_ptr.vmem [resolvable:$true] %s107_s12 }
  0x29   :  { %s185_s13 = scalar_lea.vmem %s108_s12, 512  ;;  %p190_p3 = scmp.lt.s32.totalorder %s108_s12, %s108_s12 }
  0x2a   :  { %v50_v2 = vsub.s32 0, %v49_v1  ;;  %v54_v3 = vsub.s32 1, %v49_v1  ;;  %p186_p2 = scmp.ne.s32.totalorder %s108_s12, %s185_s13  ;;  %p191_p4 = scmp.lt.s32.totalorder %s185_s13, %s185_s13 }
  0x2c   :  { %v51_v9 = vrot.slane %v41_v4, %v50_v2  ;;  %v55_v10 = vrot.slane %v41_v4, %v54_v3  ;;  %v82_v32 = vrot.slane %v42_v31, %v50_v2  ;;  %v86_v33 = vrot.slane %v42_v31, %v54_v3  ;;  %p192_p5 = por %p191_p4, %p190_p3 }
  0x2e   :  { %v58_v11 = vmul.f32 %v51_v9, %v43_v5  ;;  %v59_v12 = vmul.f32 %v55_v10, %v44_v6  ;;  %v60_v13 = vmul.f32 %v51_v9, %v45_v7  ;;  %v61_v14 = vmul.f32 %v55_v10, %v46_v8  ;;  %p193_p6 = pnand %p192_p5, %p186_p2 }
  0x30   :  { %v62_v15 = vsub.f32 1.0, %v58_v11  ;;  %v63_v16 = vsub.f32 1.0, %v59_v12  ;;  %v64_v17 = vsub.f32 1.0, %v60_v13  ;;  %v65_v18 = vsub.f32 1.0, %v61_v14 }
  0x32   :  { %v66_v19 = vmul.f32 1.442695, %v62_v15  ;;  %v68_v20 = vmul.f32 1.442695, %v63_v16  ;;  %v70_v21 = vmul.f32 1.442695, %v64_v17 }
  0x33   :  { %v72_v22 = vmul.f32 1.442695, %v65_v18 }
  0x34   :  { %125 = vpow2.f32 %v66_v19 }
  0x35   :  { %127 = vpow2.f32 %v68_v20 }
  0x36   :  { %129 = vpow2.f32 %v70_v21 }
  0x37   :  { %131 = vpow2.f32 %v72_v22 }
  0x3e   :  { %v126_v23 = vpop.eup %125 }
  0x3f   :  { %v128_v24 = vpop.eup %127  ;;  %v74_v25 = vadd.f32 1.0, %v126_v23 }
  0x40   :  { %v130_v26 = vpop.eup %129  ;;  %v75_v27 = vadd.f32 1.0, %v128_v24 }
  0x41   :  { %v132_v28 = vpop.eup %131  ;;  %133 = vrcp.f32 %v74_v25  ;;  %v76_v29 = vadd.f32 1.0, %v130_v26 }
  0x42   :  { %135 = vrcp.f32 %v75_v27  ;;  %v77_v30 = vadd.f32 1.0, %v132_v28 }
  0x43   :  { %137 = vrcp.f32 %v76_v29 }
  0x44   :  { %139 = vrcp.f32 %v77_v30 }
  0x4b   :  { %v134_v34 = vpop.eup %133 }
  0x4c   :  { %v136_v35 = vpop.eup %135  ;;  %v90_v36 = vmul.f32 %v134_v34, %v82_v32 }
  0x4d   :  { %v138_v37 = vpop.eup %137  ;;  %v92_v38 = vmul.f32 %v136_v35, %v86_v33 }
  0x4e   :  { %v140_v39 = vpop.eup %139  ;;  %97 = vst [vmem:[#allocation7] sm:$0xff] %v90_v36  ;;  %v94_v40 = vmul.f32 %v138_v37, %v82_v32 }
  0x4f   :  { %99 = vst.msk [vmem:[#allocation7 + $0x8] sm:$0xff] %vm98_vm0, %v92_v38  ;;  %v96_v41 = vmul.f32 %v140_v39, %v86_v33 }
  0x50   :  { %100 = vst [vmem:[#allocation7 + $0x10] sm:$0xff] %v94_v40 }
  0x51   :  { %101 = vst.msk [vmem:[#allocation7 + $0x18] sm:$0xff] %vm98_vm0, %v96_v41 }
  0x52   :  { %196 = shalt.err (!%p193_p6)
}
  0x53   :  { %s197_s15 = scalar_lea.hbm %s293_s3, 512 }
  0x54   :  { %p198_p7 = scmp.ne.s32.totalorder %s293_s3, %s197_s15  ;;  %p201_p8 = scmp.lt.u32.totalorder %s197_s15, %s293_s3 }
  0x56   :  { %p203_p9 = pnand %p201_p8, %p198_p7 }
  0x58   :  { %206 = shalt.err (!%p203_p9)
}
  0x59   :  { %113 = dma.vmem_to_hbm [thread:$0]  %s108_s12, 512, %s293_s3, [#allocation4], %s215_s0, %s215_s0, %s216_s7  }
  0x5a   :  { %211 = dma.done.wait [#allocation4], 512  }
  0x5b   :  { %212 = vsyncadd [#allocation4], 4294966784 }
  0x5c   :  { %117 = vsyncpa [#allocation3], 1 }
  0x5d   :  { %118 = vsyncpa [#allocation6], 1 }
  0x5e   :  { %119 = vsyncpa [#allocation4], 1 }

</bundles_post_ra>
